<compile_context>
chip_gen: v7x
topology: tpu7x:2x2x1
jax: 0.10.0
libtpu: 0.0.40
codegen_flags: <defaults>
</compile_context>

<pallas_src>
import functools

import jax
import jax.numpy as jnp
from jax.experimental import pallas as pl
from jax.experimental.pallas import tpu as pltpu


def _mlp_kernel(num_linear, output_dim, compute_dtype,
                x_ref, w0_ref, b0_ref, wp_ref, bp_ref, out_ref):
    """One batch tile of the MLP, entirely in VMEM/vregs.

    Activations are kept as (features, batch_tile): the batch sits on the
    128-lane axis, so loads, bias adds, tanh and the output store are all
    lane-dense.
    """
    f32 = jnp.float32
    # Full-f32 MXU passes when staying in f32; plain bf16 passes otherwise.
    prec = jax.lax.Precision.HIGHEST if compute_dtype == jnp.float32 else None

    def dense(w, u, dims):
        return jax.lax.dot_general(
            w.astype(compute_dtype), u.astype(compute_dtype), dims,
            preferred_element_type=f32, precision=prec)

    # Layer 0: fold the (batch, in) -> (in, batch) transpose into the matmul
    # by contracting x's last axis (NT form): (Dh, in) x (bn, in) -> (Dh, bn).
    h = dense(w0_ref[...], x_ref[...], (((1,), (1,)), ((), ()))) + b0_ref[...]
    h = jnp.tanh(h.astype(compute_dtype)).astype(f32)

    # Layers 1 .. L-1 come from the packed (L-1, Dh, Dh) weight buffer.
    # Zero-padded rows/cols stay exactly zero through matmul/bias/tanh.
    for i in range(num_linear - 1):
        h = dense(wp_ref[i], h, (((1,), (0,)), ((), ()))) + bp_ref[i]
        if i < num_linear - 2:          # Tanh after every Linear but the last
            h = jnp.tanh(h.astype(compute_dtype)).astype(f32)

    out_ref[...] = h[:output_dim, :].astype(out_ref.dtype)


def _pick_batch_tile(batch, block_n_max):
    """Choose (block_n, padded_batch): lane-dense tile, bounded padding waste."""
    lane = 128
    padded_min = pl.cdiv(batch, lane) * lane          # minimal 128-aligned batch
    target = min(block_n_max, padded_min)
    if padded_min >= 2 * lane:
        # Keep >= 2 grid steps so v7x's two TensorCores both get work via the
        # ("parallel",) grid axis; costs at most one extra ~0.35us step elsewhere.
        target = min(target, padded_min // 2)
    block_n = max(lane, (target // lane) * lane)
    # Shrink the tile until padding waste is < 1/8 of the real work.
    while block_n > lane:
        padded = pl.cdiv(padded_min, block_n) * block_n
        if (padded - padded_min) * 8 <= padded_min:
            break
        block_n -= lane
    padded = pl.cdiv(padded_min, block_n) * block_n
    return block_n, padded


def _pack_params(weights, biases):
    """Zero-pad + pack the Linear params into 4 arrays.

    Returns (w0, b0, wpack, bpack, Dh):
      w0    : (Dh, input_dim)   -- layer 0 weight, PyTorch-native (fan_out, fan_in)
      b0    : (Dh, 1)
      wpack : (L-1, Dh, Dh)     -- layers 1..L-1, zero-padded
      bpack : (L-1, Dh, 1)
    """
    L = len(weights)
    dims = [w.shape[0] for w in weights] + [w.shape[1] for w in weights[1:]]
    Dh = max(dims)
    Dh = ((Dh + 7) // 8) * 8                           # sublane-align
    f32 = jnp.float32

    fo0 = weights[0].shape[0]
    w0 = jnp.zeros((Dh, weights[0].shape[1]), f32).at[:fo0].set(weights[0].astype(f32))
    b0 = jnp.zeros((Dh, 1), f32).at[:fo0, 0].set(biases[0].reshape(-1).astype(f32))

    wpack = jnp.zeros((L - 1, Dh, Dh), f32)
    bpack = jnp.zeros((L - 1, Dh, 1), f32)
    for i in range(1, L):
        fo, fi = weights[i].shape
        wpack = wpack.at[i - 1, :fo, :fi].set(weights[i].astype(f32))
        bpack = bpack.at[i - 1, :fo, 0].set(biases[i].reshape(-1).astype(f32))
    return w0, b0, wpack, bpack, Dh


def mlp_forward(x, weights, biases, *, block_n_max=2048, compute_dtype=jnp.float32):
    """Forward pass matching the PyTorch MLP.

    x:          (batch, input_dim)
    weights[i]: (fan_out_i, fan_in_i) -- PyTorch-native Linear weight
    biases[i]:  (fan_out_i,)
    returns:    (batch, output_dim)

    compute_dtype=jnp.bfloat16 is recommended on v6e/v7x (bf16 MXU/VPU/EUP,
    f32 accumulation kept); keep jnp.float32 on v5e.
    """
    batch, input_dim = x.shape
    output_dim = weights[-1].shape[0]
    num_linear = len(weights)
    assert num_linear >= 2, "MLP module always has >= 2 Linear layers"

    block_n, padded = _pick_batch_tile(batch, block_n_max)
    grid = (padded // block_n,)

    # Pad the batch only as far as the chosen tiling requires (no transpose,
    # no full-copy staging buffer).
    if padded != batch:
        x = jnp.pad(x, ((0, padded - batch), (0, 0)))

    # Pack 2*L tiny parameter tensors into 4 inputs -> 4 DMAs instead of 2*L.
    # TODO(synk): for a training loop, hoist this packing out of the per-step path.
    w0, b0, wpack, bpack, _ = _pack_params(weights, biases)

    in_specs = [
        pl.BlockSpec((block_n, input_dim), lambda i: (i, 0)),   # x: batch tile
        pl.BlockSpec(w0.shape, lambda i: (0, 0)),               # resident params
        pl.BlockSpec(b0.shape, lambda i: (0, 0)),
        pl.BlockSpec(wpack.shape, lambda i: (0, 0, 0)),
        pl.BlockSpec(bpack.shape, lambda i: (0, 0, 0)),
    ]
    out_spec = pl.BlockSpec((output_dim, block_n), lambda i: (0, i))

    param_bytes = sum(int(a.size) * a.dtype.itemsize for a in (w0, b0, wpack, bpack))
    cost = pl.CostEstimate(
        flops=2 * padded * sum(int(w.shape[0]) * int(w.shape[1]) for w in weights),
        transcendentals=padded * sum(int(w.shape[0]) for w in weights[:-1]),
        bytes_accessed=padded * input_dim * x.dtype.itemsize
        + param_bytes
        + output_dim * padded * x.dtype.itemsize,
    )

    kernel = functools.partial(_mlp_kernel, num_linear, output_dim, compute_dtype)

    out_t = pl.pallas_call(
        kernel,
        out_shape=jax.ShapeDtypeStruct((output_dim, padded), x.dtype),
        grid_spec=pltpu.PrefetchScalarGridSpec(
            num_scalar_prefetch=0,
            grid=grid,
            in_specs=in_specs,
            out_specs=out_spec,
        ),
        compiler_params=pltpu.CompilerParams(
            dimension_semantics=("parallel",),
        ),
        cost_estimate=cost,
    )(x, w0, b0, wpack, bpack)

    # Back to (batch, output_dim), dropping the padding columns.
    return out_t[:, :batch].T


def init_mlp_params(key, input_dim, hidden_dim, num_layers, output_dim):
    """PyTorch nn.Linear-style init: uniform(-1/sqrt(fan_in), 1/sqrt(fan_in))."""
    dims = [input_dim] + [hidden_dim] * num_layers + [output_dim]
    weights, biases = [], []
    for i in range(len(dims) - 1):
        fan_in, fan_out = dims[i], dims[i + 1]
        key, kw, kb = jax.random.split(key, 3)
        bound = float(fan_in) ** -0.5
        w = jax.random.uniform(kw, (fan_out, fan_in), jnp.float32, -bound, bound)
        b = jax.random.uniform(kb, (fan_out,), jnp.float32, -bound, bound)
        weights.append(w)
        biases.append(b)
    return weights, biases


def mlp_reference(x, weights, biases):
    """Pure-JAX reference in the PyTorch convention: y = x @ W.T + b (full f32)."""
    h = x
    n = len(weights)
    for i, (w, b) in enumerate(zip(weights, biases)):
        h = jax.lax.dot_general(h, w, (((1,), (1,)), ((), ())),
                                precision=jax.lax.Precision.HIGHEST) + b
        if i < n - 1:
            h = jnp.tanh(h)
    return h


if __name__ == "__main__":
    # Small shapes consistent with the 1-D heat-conduction PINN setup.
    input_dim = 2      # (x, t)
    hidden_dim = 32
    num_layers = 3     # -> 4 Linear layers total, Tanh between them
    output_dim = input_dim
    batch = 200        # not a multiple of 128 -> exercises padding + 2-step grid

    key = jax.random.PRNGKey(0)
    key, kx = jax.random.split(key)
    x = jax.random.normal(kx, (batch, input_dim), dtype=jnp.float32)

    weights, biases = init_mlp_params(key, input_dim, hidden_dim, num_layers, output_dim)

    y = mlp_forward(x, weights, biases)
    y = jax.block_until_ready(y)

    y_ref = mlp_reference(x, weights, biases)
    assert y.shape == (batch, output_dim)
    err = float(jnp.max(jnp.abs(y - y_ref)))
    assert jnp.allclose(y, y_ref, atol=1e-5, rtol=1e-4), f"mismatch vs reference, max abs err={err}"

    print("KERNEL_OK")
</pallas_src>

<mosaic_0001>
module attributes {stable_mosaic.version = 11 : i64} {
  func.func @_mlp_kernel(%arg0: i32, %arg1: memref<128x2xf32, #tpu.memory_space<vmem>>, %arg2: memref<32x2xf32, #tpu.memory_space<vmem>>, %arg3: memref<32x1xf32, #tpu.memory_space<vmem>>, %arg4: memref<3x32x32xf32, #tpu.memory_space<vmem>>, %arg5: memref<3x32x1xf32, #tpu.memory_space<vmem>>, %arg6: memref<2x128xf32, #tpu.memory_space<vmem>>) attributes {dimension_semantics = [#tpu.dimension_semantics<parallel>], iteration_bounds = array<i64: 2>, scalar_prefetch = 0 : i64, scratch_operands = 0 : i64, tpu.core_type = #tpu.core_type<tc>, window_params = [{transform_indices = @transform_0, window_bounds = array<i64: 128, 2>}, {pipeline_mode = #tpu.pipeline_mode<synchronous>, transform_indices = @transform_1, window_bounds = array<i64: 32, 2>}, {pipeline_mode = #tpu.pipeline_mode<synchronous>, transform_indices = @transform_2, window_bounds = array<i64: 32, 1>}, {pipeline_mode = #tpu.pipeline_mode<synchronous>, transform_indices = @transform_3, window_bounds = array<i64: 3, 32, 32>}, {pipeline_mode = #tpu.pipeline_mode<synchronous>, transform_indices = @transform_4, window_bounds = array<i64: 3, 32, 1>}, {transform_indices = @transform_5, window_bounds = array<i64: 2, 128>}]} {
    %c0 = arith.constant 0 : index
    %c0_0 = arith.constant 0 : index
    %0 = vector.load %arg2[%c0, %c0_0] : memref<32x2xf32, #tpu.memory_space<vmem>>, vector<32x2xf32>
    %c0_1 = arith.constant 0 : index
    %c0_2 = arith.constant 0 : index
    %1 = vector.load %arg1[%c0_1, %c0_2] : memref<128x2xf32, #tpu.memory_space<vmem>>, vector<128x2xf32>
    %cst = arith.constant dense<0.000000e+00> : vector<32x128xf32>
    %2 = tpu.matmul %0, %1, %cst {dimension_numbers = #tpu.dot_dimension_numbers<[1], [1], [0], [0], [0, 0, 1, 0], [], []>, precision = #tpu.contract_precision<fp32>} : vector<32x2xf32>, vector<128x2xf32>, vector<32x128xf32> -> vector<32x128xf32>
    %c0_3 = arith.constant 0 : index
    %c0_4 = arith.constant 0 : index
    %3 = vector.load %arg3[%c0_3, %c0_4] : memref<32x1xf32, #tpu.memory_space<vmem>>, vector<32x1xf32>
    %4 = vector.broadcast %3 : vector<32x1xf32> to vector<32x128xf32>
    %5 = arith.addf %2, %4 : vector<32x128xf32>
    %6 = math.tanh %5 : vector<32x128xf32>
    %c0_5 = arith.constant 0 : index
    %c0_6 = arith.constant 0 : index
    %c0_7 = arith.constant 0 : index
    %7 = vector.load %arg4[%c0_5, %c0_6, %c0_7] : memref<3x32x32xf32, #tpu.memory_space<vmem>>, vector<1x32x32xf32>
    %8 = vector.shape_cast %7 : vector<1x32x32xf32> to vector<32x32xf32>
    %cst_8 = arith.constant dense<0.000000e+00> : vector<32x128xf32>
    %9 = tpu.matmul %8, %6, %cst_8 {dimension_numbers = #tpu.dot_dimension_numbers<[1], [0], [0], [1], [0, 0, 1, 1], [], []>, precision = #tpu.contract_precision<fp32>} : vector<32x32xf32>, vector<32x128xf32>, vector<32x128xf32> -> vector<32x128xf32>
    %c0_9 = arith.constant 0 : index
    %c0_10 = arith.constant 0 : index
    %c0_11 = arith.constant 0 : index
    %10 = vector.load %arg5[%c0_9, %c0_10, %c0_11] : memref<3x32x1xf32, #tpu.memory_space<vmem>>, vector<1x32x1xf32>
    %11 = vector.shape_cast %10 : vector<1x32x1xf32> to vector<32x1xf32>
    %12 = vector.broadcast %11 : vector<32x1xf32> to vector<32x128xf32>
    %13 = arith.addf %9, %12 : vector<32x128xf32>
    %14 = math.tanh %13 : vector<32x128xf32>
    %c1 = arith.constant 1 : index
    %c0_12 = arith.constant 0 : index
    %c0_13 = arith.constant 0 : index
    %15 = vector.load %arg4[%c1, %c0_12, %c0_13] : memref<3x32x32xf32, #tpu.memory_space<vmem>>, vector<1x32x32xf32>
    %16 = vector.shape_cast %15 : vector<1x32x32xf32> to vector<32x32xf32>
    %cst_14 = arith.constant dense<0.000000e+00> : vector<32x128xf32>
    %17 = tpu.matmul %16, %14, %cst_14 {dimension_numbers = #tpu.dot_dimension_numbers<[1], [0], [0], [1], [0, 0, 1, 1], [], []>, precision = #tpu.contract_precision<fp32>} : vector<32x32xf32>, vector<32x128xf32>, vector<32x128xf32> -> vector<32x128xf32>
    %c1_15 = arith.constant 1 : index
    %c0_16 = arith.constant 0 : index
    %c0_17 = arith.constant 0 : index
    %18 = vector.load %arg5[%c1_15, %c0_16, %c0_17] : memref<3x32x1xf32, #tpu.memory_space<vmem>>, vector<1x32x1xf32>
    %19 = vector.shape_cast %18 : vector<1x32x1xf32> to vector<32x1xf32>
    %20 = vector.broadcast %19 : vector<32x1xf32> to vector<32x128xf32>
    %21 = arith.addf %17, %20 : vector<32x128xf32>
    %22 = math.tanh %21 : vector<32x128xf32>
    %c2 = arith.constant 2 : index
    %c0_18 = arith.constant 0 : index
    %c0_19 = arith.constant 0 : index
    %23 = vector.load %arg4[%c2, %c0_18, %c0_19] : memref<3x32x32xf32, #tpu.memory_space<vmem>>, vector<1x32x32xf32>
    %24 = vector.shape_cast %23 : vector<1x32x32xf32> to vector<32x32xf32>
    %cst_20 = arith.constant dense<0.000000e+00> : vector<32x128xf32>
    %25 = tpu.matmul %24, %22, %cst_20 {dimension_numbers = #tpu.dot_dimension_numbers<[1], [0], [0], [1], [0, 0, 1, 1], [], []>, precision = #tpu.contract_precision<fp32>} : vector<32x32xf32>, vector<32x128xf32>, vector<32x128xf32> -> vector<32x128xf32>
    %c2_21 = arith.constant 2 : index
    %c0_22 = arith.constant 0 : index
    %c0_23 = arith.constant 0 : index
    %26 = vector.load %arg5[%c2_21, %c0_22, %c0_23] : memref<3x32x1xf32, #tpu.memory_space<vmem>>, vector<1x32x1xf32>
    %27 = vector.shape_cast %26 : vector<1x32x1xf32> to vector<32x1xf32>
    %28 = vector.broadcast %27 : vector<32x1xf32> to vector<32x128xf32>
    %29 = arith.addf %25, %28 : vector<32x128xf32>
    %30 = vector.extract_strided_slice %29 {offsets = [0, 0], sizes = [2, 128], strides = [1, 1]} : vector<32x128xf32> to vector<2x128xf32>
    %c0_24 = arith.constant 0 : index
    %c0_25 = arith.constant 0 : index
    %31 = vector.load %arg6[%c0_24, %c0_25] : memref<2x128xf32, #tpu.memory_space<vmem>>, vector<2x128xf32>
    tpu.vector_store %arg6[%c0_24, %c0_25], %30 {strides = array<i32>} : memref<2x128xf32, #tpu.memory_space<vmem>>, vector<2x128xf32>,
    return
  }
  func.func @transform_0(%arg0: i32) -> (i32, i32) {
    %c0_i32 = arith.constant 0 : i32
    %c0_i32_0 = arith.constant 0 : i32
    return %arg0, %c0_i32 : i32, i32
  }
  func.func @transform_1(%arg0: i32) -> (i32, i32) {
    %c0_i32 = arith.constant 0 : i32
    %c0_i32_0 = arith.constant 0 : i32
    %c0_i32_1 = arith.constant 0 : i32
    return %c0_i32, %c0_i32_0 : i32, i32
  }
  func.func @transform_2(%arg0: i32) -> (i32, i32) {
    %c0_i32 = arith.constant 0 : i32
    %c0_i32_0 = arith.constant 0 : i32
    %c0_i32_1 = arith.constant 0 : i32
    return %c0_i32, %c0_i32_0 : i32, i32
  }
  func.func @transform_3(%arg0: i32) -> (i32, i32, i32) {
    %c0_i32 = arith.constant 0 : i32
    %c0_i32_0 = arith.constant 0 : i32
    %c0_i32_1 = arith.constant 0 : i32
    %c0_i32_2 = arith.constant 0 : i32
    return %c0_i32, %c0_i32_0, %c0_i32_1 : i32, i32, i32
  }
  func.func @transform_4(%arg0: i32) -> (i32, i32, i32) {
    %c0_i32 = arith.constant 0 : i32
    %c0_i32_0 = arith.constant 0 : i32
    %c0_i32_1 = arith.constant 0 : i32
    %c0_i32_2 = arith.constant 0 : i32
    return %c0_i32, %c0_i32_0, %c0_i32_1 : i32, i32, i32
  }
  func.func @transform_5(%arg0: i32) -> (i32, i32) {
    %c0_i32 = arith.constant 0 : i32
    %c0_i32_0 = arith.constant 0 : i32
    return %c0_i32, %arg0 : i32, i32
  }
}

</mosaic_0001>

<bundles_post_ra>
// kernel: tpu_custom_call.1
= control target key start
LH: loop header
LB: loop body
LE: loop exit
PB: predicated region body
PF: predicated region fallthrough
CT: control target
= control target key end

     0   :  { %10 = vsyncpa [#allocation3], 0  ;;  %s5212_s0 = inlined_call_operand.vmem [shape: f32[256,2], index: 0, kind: input, shape index: {}]   ;;  %s5213_s1 = inlined_call_operand.vmem [shape: f32[32,2], index: 1, kind: input, shape index: {}]   ;;  %s5214_s2 = inlined_call_operand.vmem [shape: f32[32,1], index: 2, kind: input, shape index: {}]   ;;  %s5215_s3 = inlined_call_operand.vmem [shape: f32[3,32,32], index: 3, kind: input, shape index: {}]   ;;  %s5216_s4 = inlined_call_operand.vmem [shape: f32[3,32,1], index: 4, kind: input, shape index: {}]   ;;  %s5217_s5 = inlined_call_operand.hbm [shape: f32[2,256], index: 5, kind: output, shape index: {}]  }
   0x1   :  { %12 = vsyncpa [#allocation3 + $0x1], 0  ;;  %s4484_s18 = smov 0   ;;  %s4486_s19 = smov 0  }
   0x2   :  { %s4488_s20 = smov 0   ;;  %s4490_s21 = smov 0  }
   0x3 LB: > { %s4505_s22 = sadd.s32 4294967295, %s4450_s21   ;;  %s3132_s23 = sadd.s32 4294967294, %s4450_s21   ;;  %s4450_s21 = sphi %s4490_s21, %s5227_s21   ;;  %s4446_s20 = sphi %s4488_s20, %s5226_s20   ;;  %s4442_s19 = sphi %s4486_s19, %s5225_s19   ;;  %s4438_s18 = sphi %s4484_s18, %s5224_s18  }
   0x4   : > { %s4509_s24 = sadd.s32 1, %s4450_s21   ;;  %s135_s25 = sadd.s32 1, %s4446_s20 }
   0x5   : > { %s132_s26 = ssub.s32 %s4450_s21, %s4509_s24  ;;  %p145_p0 = scmp.ne.s32.totalorder %s4446_s20, %s4442_s19 }
   0x6   : > { %p133_p1 = scmp.eq.s32.totalorder %s132_s26, 0  ;;  %p146_p2 = scmp.eq.s32.totalorder %s4505_s22, 1 }
   0x7   : > { %p151_p3 = scmp.ne.s32.totalorder %s4442_s19, %s4438_s18  ;;  %p152_p4 = scmp.eq.s32.totalorder %s3132_s23, 1 }
   0x8   : > { %s4520_s27 = scalar_select %p133_p1, %s4446_s20, %s135_s25  }
   0x9   : > { %p4522_p5 = por %p146_p2, %p145_p0  ;;  %p4526_p6 = por %p152_p4, %p151_p3 }
   0xa   : > { %p3135_p7 = scmp.ge.s32.totalorder %s4450_s21, 1  ;;  %p191_p8 = scmp.lt.s32.totalorder %s4450_s21, 3 }
   0xc   : > { %p192_p9 = pnand %p3135_p7, %p191_p8 }
   0xd   : > { %s3137_s30 = sshll.u32 (!%p192_p9), %s4505_s22, 4  ;;  %vm269_vm0 = vcmask (!%p192_p9), 15360   ;;  %v225_v0 = vld [vmem:[%s5213_s1] sm:$0xff] (!%p192_p9)  ;;  %vm1132_vm1 = vcmask (!%p192_p9), 261120   ;;  %s216_s26 = sand.u32 (!%p192_p9), 1, %s4442_s19  }
   0xe   : > { %195 = sbr.rel (%p192_p9) target bundleno = 1352 (0x548), region = 40  ;;  %p220_p10 = scmp.lt.s32.totalorder (!%p192_p9), %s3137_s30, 31  ;;  %v271_v1 = vsel (!%p192_p9), %vm269_vm0, %v225_v0, 0 }
   0xf   : > { %v4537_v2 = vand.u32 (!%p192_p9), 4294901760, %v271_v1  ;;  %s3156_s6 = sshll.u32 (!%p192_p9), %s4505_s22, 5  ;;  %s3060_s22 = scalar_lea.sflag (!%p192_p9), [#allocation3], %s216_s26 }
  0x10   : > { %s4453_s13 = smov (!%p192_p9), [#allocation2]  }
  0x11   : > { %v4540_v3 = vsub.f32 (!%p192_p9), %v271_v1, %v4537_v2  ;;  %s4392_s14 = sshll.u32 (!%p192_p9), %s4453_s13, 4  ;;  %s4393_s14 = int_to_ptr.vmem [resolvable:$false] %s4392_s14 }
  0x12   : > { %s4394_s15 = scalar_lea.vmem (!%p192_p9), %s4393_s14, 64 }
  0x13   : > { %3531 = vmatprep.mubr.f32.mxu0 (!%p192_p9), %v4540_v3  ;;  %v413_v37 = vand.u32 (!%p192_p9), 4294901760, %v4540_v3 }
  0x15   : > { %s5229_s30 = smov (!%p220_p10, %s3137_s30), 31  ;;  %v414_v43 = vsub.f32 %v4540_v3, %v413_v37 }
  0x16   : > { %s3138_s8 = sshll.u32 %s5229_s30, 3  ;;  %s3136_s30 = sshll.u32 %s216_s26, 1 }
  0x17   : > { %s4545_s11 = scalar_lea.vmem %s5212_s0, %s3138_s8  ;;  %v415_v48 = vand.u32 4294901760, %v414_v43  ;;  %s218_s7 = scalar_lea.vmem [#allocation2], %s3136_s30 }
  0x18   : > { %v229_v4 = vld [vmem:[%s4545_s11] sm:$0xff]  ;;  %v230_v5 = vld [vmem:[%s4545_s11 + $0x8] sm:$0xff]  ;;  %v231_v6 = vld [vmem:[%s4545_s11 + $0x10] sm:$0xff]  ;;  %s3073_s8 = sshll.u32 %s218_s7, 4  ;;  %s5172_s8 = int_to_ptr.vmem [resolvable:$true] %s3073_s8 }
  0x19   : > { %v283_v7 = vsel %vm269_vm0, %v229_v4, 0  ;;  %v286_v8 = vsel %vm269_vm0, %v230_v5, 0  ;;  %v232_v9 = vld [vmem:[%s4545_s11 + $0x18] sm:$0xff]  ;;  %v289_v10 = vsel %vm269_vm0, %v231_v6, 0  ;;  %v233_v11 = vld [vmem:[%s4545_s11 + $0x20] sm:$0xff]  ;;  %v234_v12 = vld [vmem:[%s4545_s11 + $0x28] sm:$0xff]  ;;  %3455 = vmatprep.mubr.f32.mxu1 %v415_v48  ;;  %p4395_p0 = scmp.lt.s32.totalorder %s5172_s8, %s4393_s14 }
  0x1a   : > { %v331_v13 = vand.u32 4294901760, %v283_v7  ;;  %v334_v14 = vand.u32 4294901760, %v286_v8  ;;  %v292_v15 = vsel %vm269_vm0, %v232_v9, 0  ;;  %v337_v16 = vand.u32 4294901760, %v289_v10  ;;  %v235_v30 = vld [vmem:[%s4545_s11 + $0x30] sm:$0xff]  ;;  %v236_v31 = vld [vmem:[%s4545_s11 + $0x38] sm:$0xff] }
  0x1b   : > { %v340_v17 = vand.u32 4294901760, %v292_v15  ;;  %v295_v18 = vsel %vm269_vm0, %v233_v11, 0  ;;  %v298_v19 = vsel %vm269_vm0, %v234_v12, 0  ;;  %v301_v34 = vsel %vm269_vm0, %v235_v30, 0  ;;  %v237_v41 = vld [vmem:[%s4545_s11 + $0x40] sm:$0xff]  ;;  %v238_v42 = vld [vmem:[%s4545_s11 + $0x48] sm:$0xff] }
  0x1c   : > { %v4560_v20 = vpack.c.bf16 %v334_v14, %v331_v13  ;;  %v4562_v21 = vsub.f32 %v283_v7, %v331_v13  ;;  %v4564_v22 = vsub.f32 %v286_v8, %v334_v14  ;;  %v4566_v23 = vsub.f32 %v289_v10, %v337_v16  ;;  %v239_v62 = vld [vmem:[%s4545_s11 + $0x50] sm:$0xff]  ;;  %v240_v63 = vld [vmem:[%s4545_s11 + $0x58] sm:$0xff]  ;;  %s4388_s12 = scalar_lea.vmem %s5172_s8, 32 }
  0x1d   : > { %v4568_v24 = vpack.c.bf16 %v340_v17, %v337_v16  ;;  %v4570_v25 = vsub.f32 %v292_v15, %v340_v17  ;;  %v343_v27 = vand.u32 4294901760, %v295_v18  ;;  %v346_v28 = vand.u32 4294901760, %v298_v19  ;;  %v241_v15 = vld [vmem:[%s4545_s11 + $0x60] sm:$0xff]  ;;  %v242_v16 = vld [vmem:[%s4545_s11 + $0x68] sm:$0xff]  ;;  %p4389_p11 = scmp.ne.s32.totalorder %s5172_s8, %s4388_s12  ;;  %p4396_p1 = scmp.lt.s32.totalorder %s4394_s15, %s4388_s12 }
  0x1e   : > { %v3967_v26 = vpack.c.bf16 %v4564_v22, %v4562_v21  ;;  %3904 = vmatprep.subr.bf16.mxu1 %v4560_v20  ;;  %v304_v35 = vsel %vm269_vm0, %v236_v31, 0  ;;  %v349_v39 = vand.u32 4294901760, %v301_v34  ;;  %v454_v44 = vand.u32 4294901760, %v4562_v21 }
  0x1f   : > { %v3971_v29 = vpack.c.bf16 %v4570_v25, %v4566_v23  ;;  %3906 = vmatpush3.bf16.xpose.msra.mxu1 %v4560_v20  ;;  %v4581_v32 = vsub.f32 %v295_v18, %v343_v27  ;;  %v4583_v33 = vsub.f32 %v298_v19, %v346_v28  ;;  %v4587_v36 = vpack.c.bf16 %v346_v28, %v343_v27  ;;  %p4390_p12 = pnand %p4389_p11, %p4522_p5  ;;  %p4397_p2 = por %p4396_p1, %p4395_p0 }
  0x20   : > { %3968 = vmatprep.subr.bf16.mxu0 %v3967_v26  ;;  %3908 = vmatprep.subr.bf16.mxu1 %v4568_v24  ;;  %v352_v40 = vand.u32 4294901760, %v304_v35  ;;  %v461_v45 = vand.u32 4294901760, %v4564_v22  ;;  %v4601_v46 = vsub.f32 %v301_v34, %v349_v39  ;;  %v307_v49 = vsel %vm269_vm0, %v237_v41, 0 }
  0x21   : > { %3970 = vmatpush3.bf16.xpose.msra.mxu0 %v3967_v26  ;;  %v3975_v38 = vpack.c.bf16 %v4583_v33, %v4581_v32  ;;  %v310_v50 = vsel %vm269_vm0, %v238_v42, 0  ;;  %v468_v53 = vand.u32 4294901760, %v4566_v23  ;;  %v475_v54 = vand.u32 4294901760, %v4570_v25  ;;  %p4391_p13 = pneg %p4390_p12 }
  0x22   : > { %3972 = vmatprep.subr.bf16.mxu0 %v3971_v29  ;;  %v4603_v47 = vsub.f32 %v304_v35, %v352_v40  ;;  %v4611_v51 = vpack.c.bf16 %v461_v45, %v454_v44  ;;  %v4613_v52 = vpack.c.bf16 %v352_v40, %v349_v39  ;;  %v482_v55 = vand.u32 4294901760, %v4581_v32  ;;  %v244_v39 = vld [vmem:[%s4545_s11 + $0x78] sm:$0xff] }
  0x23   : > { %v489_v56 = vand.u32 4294901760, %v4583_v33  ;;  %v355_v58 = vand.u32 4294901760, %v307_v49  ;;  %v358_v59 = vand.u32 4294901760, %v310_v50  ;;  %v4625_v60 = vpack.c.bf16 %v475_v54, %v468_v53  ;;  %p4398_p3 = pnand %p4397_p2, %p4391_p13 }
  0x24   : > { %v3979_v57 = vpack.c.bf16 %v4603_v47, %v4601_v46  ;;  %v496_v0 = vand.u32 4294901760, %v4601_v46  ;;  %v503_v1 = vand.u32 4294901760, %v4603_v47  ;;  %v313_v7 = vsel %vm269_vm0, %v239_v62, 0  ;;  %v227_v62 = vld [vmem:[%s5213_s1 + $0x10] sm:$0xff] }
  0x25   : > { %v4632_v61 = vpack.c.bf16 %v489_v56, %v482_v55  ;;  %v4639_v4 = vsub.f32 %v307_v49, %v355_v58  ;;  %v4641_v5 = vsub.f32 %v310_v50, %v358_v59  ;;  %v316_v8 = vsel %vm269_vm0, %v240_v63, 0 }
  0x26   : > { %v4647_v6 = vpack.c.bf16 %v503_v1, %v496_v0  ;;  %v4651_v9 = vpack.c.bf16 %v358_v59, %v355_v58  ;;  %v361_v11 = vand.u32 4294901760, %v313_v7  ;;  %v364_v12 = vand.u32 4294901760, %v316_v8  ;;  %v226_v59 = vld [vmem:[%s5213_s1 + $0x8] sm:$0xff] }
  0x27   : > { %3910 = vmatpush3.bf16.xpose.msra.mxu1 %v4568_v24  ;;  %v3983_v10 = vpack.c.bf16 %v4641_v5, %v4639_v4  ;;  %v510_v13 = vand.u32 4294901760, %v4639_v4  ;;  %v517_v14 = vand.u32 4294901760, %v4641_v5  ;;  %v319_v26 = vsel %vm269_vm0, %v241_v15, 0 }
  0x28   : > { %3912 = vmatprep.subr.bf16.mxu1 %v4587_v36  ;;  %v4667_v18 = vsub.f32 %v313_v7, %v361_v11  ;;  %v4669_v19 = vsub.f32 %v316_v8, %v364_v12  ;;  %v322_v27 = vsel %vm269_vm0, %v242_v16, 0  ;;  %v4673_v28 = vpack.c.bf16 %v364_v12, %v361_v11  ;;  %v228_v16 = vld [vmem:[%s5213_s1 + $0x18] sm:$0xff] }
  0x29   : > { %3974 = vmatpush3.bf16.xpose.msra.mxu0 %v3971_v29  ;;  %v4665_v17 = vpack.c.bf16 %v517_v14, %v510_v13  ;;  %v367_v30 = vand.u32 4294901760, %v319_v26  ;;  %v370_v31 = vand.u32 4294901760, %v322_v27  ;;  %v328_v48 = vsel %vm269_vm0, %v244_v39, 0 }
  0x2a   : > { %3976 = vmatprep.subr.bf16.mxu0 %v3975_v38  ;;  %v3987_v29 = vpack.c.bf16 %v4669_v19, %v4667_v18  ;;  %v524_v34 = vand.u32 4294901760, %v4667_v18  ;;  %v531_v35 = vand.u32 4294901760, %v4669_v19  ;;  %v376_v58 = vand.u32 4294901760, %v328_v48 }
  0x2b   : > { %v4689_v41 = vsub.f32 %v319_v26, %v367_v30  ;;  %v4691_v42 = vsub.f32 %v322_v27, %v370_v31  ;;  %v4695_v49 = vpack.c.bf16 %v370_v31, %v367_v30  ;;  %v274_v8 = vsel %vm269_vm0, %v226_v59, 0 }
  0x2c   : > { %v4687_v40 = vpack.c.bf16 %v531_v35, %v524_v34  ;;  %v4718_v12 = vsub.f32 %v328_v48, %v376_v58  ;;  %v277_v15 = vsel %vm269_vm0, %v227_v62, 0  ;;  %v4726_v27 = vand.u32 4294901760, %v274_v8 }
  0x2d   : > { %v3991_v50 = vpack.c.bf16 %v4691_v42, %v4689_v41  ;;  %v538_v63 = vand.u32 4294901760, %v4689_v41  ;;  %v545_v7 = vand.u32 4294901760, %v4691_v42  ;;  %v462_v30 = vsub.f32 %v4564_v22, %v461_v45 }
  0x2e   : > { %v4734_v31 = vand.u32 4294901760, %v277_v15  ;;  %v559_v48 = vand.u32 4294901760, %v4718_v12 }
  0x2f   : > { %3914 = vmatpush3.bf16.xpose.msra.mxu1 %v4587_v36 }
  0x30   : > { %3916 = vmatprep.subr.bf16.mxu1 %v4613_v52  ;;  %v4749_v45 = vsub.f32 %v277_v15, %v4734_v31  ;;  %v476_v15 = vsub.f32 %v4570_v25, %v475_v54 }
  0x31   : > { %3978 = vmatpush3.bf16.xpose.msra.mxu0 %v3975_v38  ;;  %v243_v38 = vld [vmem:[%s4545_s11 + $0x70] sm:$0xff]  ;;  %s5170_s11 = scalar_lea.hbm %s5217_s5, %s3156_s6 }
  0x32   : > { %3980 = vmatprep.subr.bf16.mxu0 %v3979_v57  ;;  %v325_v43 = vsel %vm269_vm0, %v243_v38, 0  ;;  %v280_v38 = vsel %vm269_vm0, %v228_v16, 0  ;;  %v5219_v62 = vand.u32 4294901760, %v4749_v45 }
  0x37   : > { %3918 = vmatpush3.bf16.xpose.msra.mxu1 %v4613_v52 }
  0x38   : > { %3920 = vmatprep.subr.bf16.mxu1 %v4651_v9 }
  0x39   : > { %3982 = vmatpush3.bf16.xpose.msra.mxu0 %v3979_v57  ;;  %v373_v57 = vand.u32 4294901760, %v325_v43 }
  0x3a   : > { %3984 = vmatprep.subr.bf16.mxu0 %v3983_v10 }
  0x3b   : > { %v4716_v11 = vsub.f32 %v325_v43, %v373_v57  ;;  %v4724_v26 = vpack.c.bf16 %v376_v58, %v373_v57  ;;  %v4743_v57 = vsub.f32 %v274_v8, %v4726_v27 }
  0x3d   : > { %v3995_v39 = vpack.c.bf16 %v4718_v12, %v4716_v11  ;;  %v552_v43 = vand.u32 4294901760, %v4716_v11  ;;  %v5218_v59 = vand.u32 4294901760, %v4743_v57 }
  0x3f   : > { %3922 = vmatpush3.bf16.xpose.msra.mxu1 %v4651_v9  ;;  %v4755_v58 = vpack.c.bf16 %v559_v48, %v552_v43 }
  0x40   : > { %3924 = vmatprep.subr.bf16.mxu1 %v4673_v28 }
  0x41   : > { %3986 = vmatpush3.bf16.xpose.msra.mxu0 %v3983_v10  ;;  %v4714_v10 = vpack.c.bf16 %v545_v7, %v538_v63 }
  0x42   : > { %3988 = vmatprep.subr.bf16.mxu0 %v3987_v29 }
  0x47   : > { %3926 = vmatpush3.bf16.xpose.msra.mxu1 %v4673_v28 }
  0x48   : > { %3928 = vmatprep.subr.bf16.mxu1 %v4695_v49 }
  0x49   : > { %3990 = vmatpush3.bf16.xpose.msra.mxu0 %v3987_v29  ;;  %v455_v29 = vsub.f32 %v4562_v21, %v454_v44  ;;  %v4746_v21 = vand.u32 4294901760, %v280_v38  ;;  %v463_v44 = vand.u32 4294901760, %v462_v30 }
  0x4a   : > { %3992 = vmatprep.subr.bf16.mxu0 %v3991_v50 }
  0x4b   : > { %v456_v22 = vand.u32 4294901760, %v455_v29  ;;  %v4760_v8 = vsub.f32 %v280_v38, %v4746_v21  ;;  %v424_v29 = vsub.f32 %v4743_v57, %v5218_v59  ;;  %v434_v38 = vsub.f32 %v4749_v45, %v5219_v62 }
  0x4c   : > { %v483_v59 = vsub.f32 %v4581_v32, %v482_v55  ;;  %v490_v62 = vsub.f32 %v4583_v33, %v489_v56  ;;  %v497_v33 = vsub.f32 %v4601_v46, %v496_v0  ;;  %v504_v55 = vsub.f32 %v4603_v47, %v503_v1 }
  0x4d   : > { %v3935_v16 = vpack.c.bf16 %v463_v44, %v456_v22  ;;  %v443_v30 = vand.u32 4294901760, %v4760_v8  ;;  %v477_v44 = vand.u32 4294901760, %v476_v15  ;;  %v511_v46 = vsub.f32 %v4639_v4, %v510_v13 }
  0x4e   : > { %v491_v15 = vand.u32 4294901760, %v490_v62  ;;  %v498_v56 = vand.u32 4294901760, %v497_v33  ;;  %v518_v47 = vsub.f32 %v4641_v5, %v517_v14  ;;  %v525_v1 = vsub.f32 %v4667_v18, %v524_v34 }
  0x4f   : > { %3930 = vmatpush3.bf16.xpose.msra.mxu1 %v4695_v49  ;;  %v444_v25 = vsub.f32 %v4760_v8, %v443_v30  ;;  %v512_v3 = vand.u32 4294901760, %v511_v46  ;;  %v532_v4 = vsub.f32 %v4669_v19, %v531_v35  ;;  %v546_v18 = vsub.f32 %v4691_v42, %v545_v7 }
  0x50   : > { %3932 = vmatprep.subr.bf16.mxu1 %v4724_v26  ;;  %v526_v5 = vand.u32 4294901760, %v525_v1 }
  0x51   : > { %3994 = vmatpush3.bf16.xpose.msra.mxu0 %v3991_v50  ;;  %v469_v50 = vsub.f32 %v4566_v23, %v468_v53  ;;  %v425_v23 = vand.u32 4294901760, %v424_v29  ;;  %v435_v53 = vand.u32 4294901760, %v434_v38  ;;  %v533_v13 = vand.u32 4294901760, %v532_v4  ;;  %v1110_v38 = vld [vmem:[%s5216_s4 + $0x10] sm:$0xff] }
  0x52   : > { %3996 = vmatprep.subr.bf16.mxu0 %v3995_v39  ;;  %v547_v34 = vand.u32 4294901760, %v546_v18  ;;  %v553_v29 = vsub.f32 %v4716_v11, %v552_v43  ;;  %v5222_v11 = vand.u32 4294901760, %v4743_v57  ;;  %v245_v43 = vld [vmem:[%s5214_s2] sm:$0xff] }
  0x53   : > { %v470_v22 = vand.u32 4294901760, %v469_v50  ;;  %v445_v50 = vand.u32 4294901760, %v444_v25  ;;  %v3955_v14 = vpack.c.bf16 %v533_v13, %v526_v5  ;;  %v3151_v25 = vld [vmem:[%s5216_s4 + $0x40] sm:$0xff] }
  0x54   : > { %v554_v42 = vand.u32 4294901760, %v553_v29 }
  0x55   : > { %v3939_v54 = vpack.c.bf16 %v477_v44, %v470_v22  ;;  %v3143_v22 = vld [vmem:[%s5216_s4 + $0x20] sm:$0xff]  ;;  %v3144_v44 = vld [vmem:[%s5216_s4 + $0x28] sm:$0xff] }
  0x57   : > { %3934 = vmatpush3.bf16.xpose.msra.mxu1 %v4724_v26 }
  0x58   : > { %3936 = vmatprep.subr.bf16.mxu1 %v3935_v16 }
  0x59   : > { %3998 = vmatpush3.bf16.xpose.msra.mxu0 %v3995_v39  ;;  %v484_v39 = vand.u32 4294901760, %v483_v59  ;;  %v505_v59 = vand.u32 4294901760, %v504_v55 }
  0x5a   : > { %4000 = vmatprep.subr.bf16.mxu0 %v4560_v20 }
  0x5b   : > { %v3943_v32 = vpack.c.bf16 %v491_v15, %v484_v39  ;;  %v3947_v62 = vpack.c.bf16 %v505_v59, %v498_v56 }
  0x5e   : > { %3456 = vmatmul.mubr.f32.vlgmr.msra.gmra.mrb[0].mxu1 %v425_v23  ;;  %v3145_v23 = vld [vmem:[%s5216_s4 + $0x30] sm:$0xff] }
  0x5f   : > { %3938 = vmatpush3.bf16.xpose.msra.mxu1 %v3935_v16  ;;  %3458 = vmatprep.mubr.f32.mxu1 %v435_v53  ;;  %v539_v16 = vsub.f32 %v4689_v41, %v538_v63  ;;  %v560_v41 = vsub.f32 %v4718_v12, %v559_v48  ;;  %v5223_v12 = vand.u32 4294901760, %v4749_v45  ;;  %v247_v48 = vld [vmem:[%s5214_s2 + $0x10] sm:$0xff]  ;;  %v1105_v53 = vld [vmem:[%s5215_s3 + $0x8] sm:$0xff] }
  0x60   : > { %3532 = vmatmul.mubr.f32.vlgmr.msra.gmra.mrb[0].mxu0 %v4743_v57  ;;  %3940 = vmatprep.subr.bf16.mxu1 %v3939_v54  ;;  %v246_v57 = vld [vmem:[%s5214_s2 + $0x8] sm:$0xff]  ;;  %v1137_v55 = vsel %vm1132_vm1, %v1105_v53, 0 }
  0x61   : > { %4002 = vmatpush3.bf16.xpose.msra.mxu0 %v4560_v20  ;;  %3534 = vmatprep.mubr.f32.mxu0 %v4749_v45  ;;  %v540_v19 = vand.u32 4294901760, %v539_v16  ;;  %v561_v63 = vand.u32 4294901760, %v560_v41  ;;  %v248_v45 = vld [vmem:[%s5214_s2 + $0x18] sm:$0xff] }
  0x62   : > { %4004 = vmatprep.subr.bf16.mxu0 %v4568_v24  ;;  %3459 = vmatmul.mubr.f32.gmra.mrb[2].mxu1 %v445_v50 }
  0x63   : > { %3493 = vmatprep.mubr.f32.mxu1 %v4537_v2  ;;  %v3959_v35 = vpack.c.bf16 %v547_v34, %v540_v19  ;;  %v3963_v7 = vpack.c.bf16 %v561_v63, %v554_v42 }
  0x64   : > { %3535 = vmatmul.mubr.f32.gmra.mrb[2].mxu0 %v4760_v8  ;;  %v1108_v8 = vld [vmem:[%s5216_s4] sm:$0xff] }
  0x65   : > { %3569 = vmatprep.mubr.f32.mxu0 %v413_v37  ;;  %v519_v37 = vand.u32 4294901760, %v518_v47 }
  0x67   : > { %3942 = vmatpush3.bf16.xpose.msra.mxu1 %v3939_v54  ;;  %v3951_v0 = vpack.c.bf16 %v519_v37, %v512_v3  ;;  %v1107_v3 = vld [vmem:[%s5215_s3 + $0x18] sm:$0xff] }
  0x68   : > { %3944 = vmatprep.subr.bf16.mxu1 %v3943_v32  ;;  %v1143_v4 = vsel %vm1132_vm1, %v1107_v3, 0 }
  0x69   : > { %4006 = vmatpush3.bf16.xpose.msra.mxu0 %v4568_v24  ;;  %v4958_v13 = vand.u32 4294901760, %v1143_v4 }
  0x6a   : > { %4008 = vmatprep.subr.bf16.mxu0 %v4587_v36 }
  0x6b   : > { %v4965_v29 = vsub.f32 %v1143_v4, %v4958_v13 }
  0x6f   : > { %3946 = vmatpush3.bf16.xpose.msra.mxu1 %v3943_v32  ;;  %v1106_v32 = vld [vmem:[%s5215_s3 + $0x10] sm:$0xff] }
  0x70   : > { %3948 = vmatprep.subr.bf16.mxu1 %v3947_v62  ;;  %v1140_v47 = vsel %vm1132_vm1, %v1106_v32, 0 }
  0x71   : > { %4010 = vmatpush3.bf16.xpose.msra.mxu0 %v4587_v36  ;;  %v4952_v1 = vand.u32 4294901760, %v1140_v47 }
  0x72   : > { %4012 = vmatprep.subr.bf16.mxu0 %v4613_v52 }
  0x77   : > { %3950 = vmatpush3.bf16.xpose.msra.mxu1 %v3947_v62 }
  0x78   : > { %3952 = vmatprep.subr.bf16.mxu1 %v3951_v0 }
  0x79   : > { %4014 = vmatpush3.bf16.xpose.msra.mxu0 %v4613_v52 }
  0x7a   : > { %4016 = vmatprep.subr.bf16.mxu0 %v4651_v9 }
  0x7f   : > { %3954 = vmatpush3.bf16.xpose.msra.mxu1 %v3951_v0  ;;  %v4950_v0 = vand.u32 4294901760, %v1137_v55 }
  0x80   : > { %3956 = vmatprep.subr.bf16.mxu1 %v3955_v14 }
  0x81   : > { %4018 = vmatpush3.bf16.xpose.msra.mxu0 %v4651_v9  ;;  %v4956_v5 = vsub.f32 %v1137_v55, %v4950_v0 }
  0x82   : > { %4020 = vmatprep.subr.bf16.mxu0 %v4673_v28 }
  0x83   : > { %v1226_v34 = vand.u32 4294901760, %v4956_v5 }
  0x87   : > { %3958 = vmatpush3.bf16.xpose.msra.mxu1 %v3955_v14  ;;  %v4961_v14 = vsub.f32 %v1140_v47, %v4952_v1 }
  0x88   : > { %3960 = vmatprep.subr.bf16.mxu1 %v3959_v35 }
  0x89   : > { %4022 = vmatpush3.bf16.xpose.msra.mxu0 %v4673_v28  ;;  %v1236_v42 = vand.u32 4294901760, %v4961_v14 }
  0x8a   : > { %4024 = vmatprep.subr.bf16.mxu0 %v4695_v49 }
  0x8f   : > { %3962 = vmatpush3.bf16.xpose.msra.mxu1 %v3959_v35 }
  0x90   : > { %3964 = vmatprep.subr.bf16.mxu1 %v3963_v7 }
  0x91   : > { %4026 = vmatpush3.bf16.xpose.msra.mxu0 %v4695_v49 }
  0x92   : > { %4028 = vmatprep.subr.bf16.mxu0 %v4724_v26 }
  0x97   : > { %3966 = vmatpush3.bf16.xpose.msra.mxu1 %v3963_v7 }
  0x99   : > { %4030 = vmatpush3.bf16.xpose.msra.mxu0 %v4724_v26 }
  0x9a   : > { %4032 = vmatprep.subr.bf16.mxu0 %v4611_v51 }
  0x9e   : > { %3494 = vmatmul.mubr.f32.vlgmr.msra.gmra.mrb[0].mxu1 %v4726_v27 }
  0x9f   : > { %3496 = vmatprep.mubr.f32.mxu1 %v4734_v31 }
  0xa0   : > { %3570 = vmatmul.mubr.f32.vlgmr.msra.gmra.mrb[0].mxu0 %v5222_v11 }
  0xa1   : > { %4034 = vmatpush3.bf16.xpose.msra.mxu0 %v4611_v51  ;;  %3572 = vmatprep.mubr.f32.mxu0 %v5223_v12  ;;  %v4452_v51 = vmov 0  }
  0xa2   : > { %4036 = vmatprep.subr.bf16.mxu0 %v4625_v60  ;;  %3497 = vmatmul.mubr.f32.gmra.mrb[2].mxu1 %v4746_v21 }
  0xa3   : > { %4362 = vset.pattern.permute.xlu0 %v4452_v51  ;;  %4363 = vset.pattern.permute.xlu1 %v4452_v51 }
  0xa4   : > { %3573 = vmatmul.mubr.f32.gmra.mrb[2].mxu0 %v443_v30  ;;  %251 = vperm.xlu0 %4362, %v245_v43   ;;  %v1109_v30 = vld [vmem:[%s5216_s4 + $0x8] sm:$0xff] }
  0xa5   : > { %3607 = vmatprep.mubr.f32.mxu0 %v4537_v2  ;;  %261 = vperm.xlu1 %4363, %v247_v48   ;;  %v1227_v48 = vsub.f32 %v4956_v5, %v1226_v34 }
  0xa8   : > { %256 = vperm.xlu0 %4362, %v246_v57  }
  0xa9   : > { %4038 = vmatpush3.bf16.xpose.msra.mxu0 %v4625_v60  ;;  %266 = vperm.xlu1 %4363, %v248_v45   ;;  %v1111_v60 = vld [vmem:[%s5216_s4 + $0x18] sm:$0xff] }
  0xaa   : > { %4040 = vmatprep.subr.bf16.mxu0 %v4632_v61 }
  0xac   : > { %1114 = vperm.xlu0 %4362, %v1108_v8   ;;  %v1246_v8 = vand.u32 4294901760, %v4965_v29 }
  0xad   : > { %1119 = vperm.xlu1 %4363, %v1109_v30  }
  0xb0   : > { %1124 = vperm.xlu0 %4362, %v1110_v38  }
  0xb1   : > { %4042 = vmatpush3.bf16.xpose.msra.mxu0 %v4632_v61  ;;  %1129 = vperm.xlu1 %4363, %v1111_v60   ;;  %v3146_v61 = vld [vmem:[%s5216_s4 + $0x38] sm:$0xff]  ;;  %v1237_v60 = vsub.f32 %v4961_v14, %v1236_v42 }
  0xb2   : > { %4044 = vmatprep.subr.bf16.mxu0 %v4647_v6 }
  0xb4   : > { %1775 = vperm.xlu0 %4362, %v3143_v22  }
  0xb5   : > { %1780 = vperm.xlu1 %4363, %v3144_v44  }
  0xb8   : > { %1785 = vperm.xlu0 %4362, %v3145_v23  }
  0xb9   : > { %4046 = vmatpush3.bf16.xpose.msra.mxu0 %v4647_v6  ;;  %1790 = vperm.xlu1 %4363, %v3146_v61  }
  0xba   : > { %4048 = vmatprep.subr.bf16.mxu0 %v4665_v17 }
  0xbc   : > { %2435 = vperm.xlu0 %4362, %v3151_v25  }
  0xc1   : > { %4050 = vmatpush3.bf16.xpose.msra.mxu0 %v4665_v17 }
  0xc2   : > { %4052 = vmatprep.subr.bf16.mxu0 %v4687_v40 }
  0xc9   : > { %4054 = vmatpush3.bf16.xpose.msra.mxu0 %v4687_v40 }
  0xca   : > { %4056 = vmatprep.subr.bf16.mxu0 %v4714_v10 }
  0xd1   : > { %4058 = vmatpush3.bf16.xpose.msra.mxu0 %v4714_v10 }
  0xd2   : > { %4060 = vmatprep.subr.bf16.mxu0 %v4755_v58 }
  0xd9   : > { %4062 = vmatpush3.bf16.xpose.msra.mxu0 %v4755_v58 }
  0xda   : > { %4064 = vmatprep.subr.bf16.mxu0 %v4560_v20 }
  0xe0   : > { %3608 = vmatmul.mubr.f32.vlgmr.msra.gmra.mrb[0].mxu0 %v4726_v27 }
  0xe1   : > { %4066 = vmatpush3.bf16.xpose.msra.mxu0 %v4560_v20  ;;  %3610 = vmatprep.mubr.f32.mxu0 %v4734_v31 }
  0xe2   : > { %4068 = vmatprep.subr.bf16.mxu0 %v4568_v24 }
  0xe4   : > { %3611 = vmatmul.mubr.f32.gmra.mrb[2].mxu0 %v4746_v21 }
  0xe5   : > { %3645 = vmatprep.mubr.f32.mxu0 %v4537_v2 }
  0xe9   : > { %4070 = vmatpush3.bf16.xpose.msra.mxu0 %v4568_v24 }
  0xea   : > { %4072 = vmatprep.subr.bf16.mxu0 %v4587_v36 }
  0xf1   : > { %4074 = vmatpush3.bf16.xpose.msra.mxu0 %v4587_v36 }
  0xf2   : > { %4076 = vmatprep.subr.bf16.mxu0 %v4613_v52 }
  0xf9   : > { %4078 = vmatpush3.bf16.xpose.msra.mxu0 %v4613_v52  ;;  %v1104_v52 = vld [vmem:[%s5215_s3] sm:$0xff] }
  0xfa   : > { %4080 = vmatprep.subr.bf16.mxu0 %v4651_v9  ;;  %v1134_v6 = vsel %vm1132_vm1, %v1104_v52, 0  ;;  %v1247_v52 = vsub.f32 %v4965_v29, %v1246_v8 }
 0x101   : > { %4082 = vmatpush3.bf16.xpose.msra.mxu0 %v4651_v9  ;;  %v4929_v9 = vand.u32 4294901760, %v1134_v6 }
 0x102   : > { %4084 = vmatprep.subr.bf16.mxu0 %v4673_v28 }
 0x103   : > { %v4932_v17 = vsub.f32 %v1134_v6, %v4929_v9  ;;  %3673 = vmatprep.mubr.f32.mxu1 %v4929_v9 }
 0x109   : > { %4086 = vmatpush3.bf16.xpose.msra.mxu0 %v4673_v28  ;;  %v1216_v28 = vand.u32 4294901760, %v4932_v17 }
 0x10a   : > { %4088 = vmatprep.subr.bf16.mxu0 %v4695_v49 }
 0x10b   : > { %v1217_v40 = vsub.f32 %v4932_v17, %v1216_v28 }
 0x111   : > { %4090 = vmatpush3.bf16.xpose.msra.mxu0 %v4695_v49  ;;  %v1218_v49 = vand.u32 4294901760, %v1217_v40 }
 0x112   : > { %4092 = vmatprep.subr.bf16.mxu0 %v4724_v26 }
 0x119   : > { %4094 = vmatpush3.bf16.xpose.msra.mxu0 %v4724_v26 }
 0x120   : > { %3646 = vmatmul.mubr.f32.vlgmr.msra.gmra.mrb[0].mxu0 %v4726_v27 }
 0x121   : > { %3648 = vmatprep.mubr.f32.mxu0 %v4734_v31 }
 0x123   : > { %v252_v10 = vpop.permute.xlu0 %251 }
 0x124   : > { %3649 = vmatmul.mubr.f32.gmra.mrb[2].mxu0 %v4746_v21  ;;  %v262_v27 = vpop.permute.xlu1 %261 }
 0x125   : > { %3659 = vmatprep.mubr.f32.mxu0 %v1218_v49  ;;  %v1238_v49 = vand.u32 4294901760, %v1237_v60 }
 0x127   : > { %v257_v26 = vpop.permute.xlu0 %256 }
 0x128   : > { %v267_v39 = vpop.permute.xlu1 %266 }
 0x171   : > { %v3495_v2 = vpop.f32.mrb[0].mxu1 }
 0x172   : > { %v598_v20 = vpop.f32.mrb[1].mxu1  ;;  %v4239_v31 = vadd.f32 %v3495_v2, %v257_v26  ;;  %v1228_v2 = vand.u32 4294901760, %v1227_v48 }
 0x173   : > { %v4241_v21 = vadd.f32 %v598_v20, %v252_v10 }
 0x175   : > { %v3498_v24 = vpop.f32.mrb[2].mxu1 }
 0x176   : > { %v610_v36 = vpop.f32.mrb[3].mxu1  ;;  %v4243_v33 = vadd.f32 %v3498_v24, %v267_v39 }
 0x177   : > { %v4245_v56 = vadd.f32 %v610_v36, %v262_v27 }
 0x1f3   : > { %v3647_v58 = vpop.f32.mrb[0].mxu0 }
 0x1f4   : > { %v4240_v54 = vadd.f32 %v4239_v31, %v3647_v58  ;;  %v1078_v50 = vpop.f32.mrb[1].mxu0  ;;  %v1248_v58 = vand.u32 4294901760, %v1247_v52 }
 0x1f5   : > { %v4242_v15 = vadd.f32 %v4241_v21, %v1078_v50 }
 0x1f6   : > { %4364 = vtanh.f32 %v4240_v54 }
 0x1f7   : > { %4366 = vtanh.f32 %v4242_v15  ;;  %v3650_v59 = vpop.f32.mrb[2].mxu0 }
 0x1f8   : > { %v4244_v62 = vadd.f32 %v4243_v33, %v3650_v59  ;;  %v1090_v46 = vpop.f32.mrb[3].mxu0 }
 0x1f9   : > { %v4246_v37 = vadd.f32 %v4245_v56, %v1090_v46  ;;  %v1115_v46 = vpop.permute.xlu0 %1114 }
 0x1fa   : > { %4368 = vtanh.f32 %v4244_v62  ;;  %v1120_v62 = vpop.permute.xlu1 %1119 }
 0x1fb   : > { %4370 = vtanh.f32 %v4246_v37 }
 0x200   : > { %v4365_v16 = vpop.eup %4364 }
 0x201   : > { %v4367_v18 = vpop.eup %4366  ;;  %v1149_v19 = vand.u32 4294901760, %v4365_v16 }
 0x202   : > { %v1146_v35 = vand.u32 4294901760, %v4367_v18 }
 0x203   : > { %v1263_v41 = vsub.f32 %v4365_v16, %v1149_v19  ;;  %v1125_v16 = vpop.permute.xlu0 %1124 }
 0x204   : > { %v4369_v63 = vpop.eup %4368  ;;  %v4968_v7 = vpack.c.bf16 %v1149_v19, %v1146_v35  ;;  %v1256_v11 = vsub.f32 %v4367_v18, %v1146_v35 }
 0x205   : > { %v4371_v12 = vpop.eup %4370  ;;  %v1155_v43 = vand.u32 4294901760, %v4369_v63  ;;  %v1264_v51 = vand.u32 4294901760, %v1263_v41 }
 0x206   : > { %v1152_v57 = vand.u32 4294901760, %v4371_v12  ;;  %4096 = vmatprep.subr.bf16.mxu0 %v4968_v7  ;;  %v1257_v45 = vand.u32 4294901760, %v1256_v11  ;;  %v4111_v30 = vpack.c.bf16 %v1263_v41, %v1256_v11 }
 0x207   : > { %4098 = vmatpush3.bf16.msra.mxu0 %v4968_v7  ;;  %v1265_v38 = vsub.f32 %v1263_v41, %v1264_v51  ;;  %v1277_v22 = vsub.f32 %v4369_v63, %v1155_v43  ;;  %v3142_v63 = vld [vmem:[%s5215_s3 + $0x38] sm:$0xff] }
 0x208   : > { %v4099_v44 = vpack.c.bf16 %v1155_v43, %v1152_v57  ;;  %v1258_v23 = vsub.f32 %v1256_v11, %v1257_v45  ;;  %v1270_v61 = vsub.f32 %v4371_v12, %v1152_v57  ;;  %v4127_v25 = vpack.c.bf16 %v1264_v51, %v1257_v45 }
 0x209   : > { %v1266_v20 = vand.u32 4294901760, %v1265_v38  ;;  %v1278_v24 = vand.u32 4294901760, %v1277_v22  ;;  %v1803_v43 = vsel %vm1132_vm1, %v3142_v63, 0  ;;  %v3149_v63 = vld [vmem:[%s5215_s3 + $0x50] sm:$0xff] }
 0x20a   : > { %4100 = vmatprep.subr.bf16.mxu0 %v4099_v44  ;;  %v1259_v36 = vand.u32 4294901760, %v1258_v23  ;;  %v1271_v6 = vand.u32 4294901760, %v1270_v61  ;;  %v4115_v40 = vpack.c.bf16 %v1277_v22, %v1270_v61  ;;  %v5037_v51 = vand.u32 4294901760, %v1803_v43 }
 0x20b   : > { %4102 = vmatpush3.bf16.msra.mxu0 %v4099_v44  ;;  %v1279_v10 = vsub.f32 %v1277_v22, %v1278_v24 }
 0x20c   : > { %v4103_v26 = vpack.c.bf16 %v1266_v20, %v1259_v36  ;;  %v1272_v27 = vsub.f32 %v1270_v61, %v1271_v6  ;;  %v4131_v31 = vpack.c.bf16 %v1278_v24, %v1271_v6  ;;  %v5044_v22 = vsub.f32 %v1803_v43, %v5037_v51 }
 0x20d   : > { %v1280_v21 = vand.u32 4294901760, %v1279_v10 }
 0x20e   : > { %3660 = vmatmul.mubr.f32.vlgmr.msra.gmra.mrb[4].mxu0 %v1228_v2  ;;  %4104 = vmatprep.subr.bf16.mxu1 %v4103_v26  ;;  %v1273_v53 = vand.u32 4294901760, %v1272_v27 }
 0x20f   : > { %4106 = vmatpush3.bf16.msra.mxu1 %v4103_v26  ;;  %3662 = vmatprep.mubr.f32.mxu0 %v1238_v49  ;;  %v1906_v49 = vand.u32 4294901760, %v5044_v22 }
 0x210   : > { %v4107_v54 = vpack.c.bf16 %v1280_v21, %v1273_v53 }
 0x212   : > { %3663 = vmatmul.mubr.f32.gmra.mrb[6].mxu0 %v1248_v58  ;;  %4108 = vmatprep.subr.bf16.mxu1 %v4107_v54 }
 0x213   : > { %4110 = vmatpush3.bf16.msra.mxu1 %v4107_v54 }
 0x214   : > { %4112 = vmatprep.subr.bf16.mxu1 %v4111_v30 }
 0x216   : > { %3674 = vmatmul.mubr.f32.vlgmr.msra.gmra.mrb[4].mxu1 %v4950_v0 }
 0x217   : > { %4114 = vmatpush3.bf16.msra.mxu1 %v4111_v30  ;;  %3676 = vmatprep.mubr.f32.mxu1 %v4952_v1 }
 0x218   : > { %4116 = vmatprep.subr.bf16.mxu1 %v4115_v40 }
 0x21a   : > { %3677 = vmatmul.mubr.f32.gmra.mrb[6].mxu1 %v4958_v13 }
 0x21b   : > { %4118 = vmatpush3.bf16.msra.mxu1 %v4115_v40  ;;  %3687 = vmatprep.mubr.f32.mxu1 %v4932_v17  ;;  %v3139_v17 = vld [vmem:[%s5215_s3 + $0x20] sm:$0xff] }
 0x21c   : > { %4120 = vmatprep.subr.bf16.mxu1 %v4968_v7 }
 0x21e   : > { %3688 = vmatmul.mubr.f32.vlgmr.msra.gmra.mrb[4].mxu1 %v4956_v5  ;;  %v1130_v5 = vpop.permute.xlu1 %1129 }
 0x21f   : > { %4122 = vmatpush3.bf16.msra.mxu1 %v4968_v7  ;;  %3690 = vmatprep.mubr.f32.mxu1 %v4961_v14  ;;  %v3141_v14 = vld [vmem:[%s5215_s3 + $0x30] sm:$0xff] }
 0x220   : > { %4124 = vmatprep.subr.bf16.mxu1 %v4099_v44 }
 0x222   : > { %3691 = vmatmul.mubr.f32.gmra.mrb[6].mxu1 %v4965_v29 }
 0x223   : > { %4126 = vmatpush3.bf16.msra.mxu1 %v4099_v44  ;;  %3701 = vmatprep.mubr.f32.mxu1 %v1216_v28  ;;  %v1794_v28 = vsel %vm1132_vm1, %v3139_v17, 0 }
 0x224   : > { %4128 = vmatprep.subr.bf16.mxu1 %v4127_v25  ;;  %v5009_v50 = vand.u32 4294901760, %v1794_v28 }
 0x226   : > { %3702 = vmatmul.mubr.f32.vlgmr.msra.gmra.mrb[4].mxu1 %v1226_v34  ;;  %v5012_v39 = vsub.f32 %v1794_v28, %v5009_v50 }
 0x227   : > { %4130 = vmatpush3.bf16.msra.mxu1 %v4127_v25  ;;  %3704 = vmatprep.mubr.f32.mxu1 %v1236_v42  ;;  %v1800_v42 = vsel %vm1132_vm1, %v3141_v14, 0 }
 0x228   : > { %4132 = vmatprep.subr.bf16.mxu1 %v4131_v31  ;;  %v1876_v15 = vand.u32 4294901760, %v5012_v39  ;;  %v5031_v12 = vand.u32 4294901760, %v1800_v42 }
 0x22a   : > { %3705 = vmatmul.mubr.f32.gmra.mrb[6].mxu1 %v1246_v8  ;;  %v5040_v57 = vsub.f32 %v1800_v42, %v5031_v12 }
 0x22b   : > { %4134 = vmatpush3.bf16.msra.mxu1 %v4131_v31  ;;  %3715 = vmatprep.mubr.f32.mxu1 %v4929_v9 }
 0x22c   : > { %4136 = vmatprep.subr.bf16.mxu1 %v4968_v7  ;;  %v1896_v23 = vand.u32 4294901760, %v5040_v57 }
 0x22e   : > { %3716 = vmatmul.mubr.f32.vlgmr.msra.gmra.mrb[4].mxu1 %v4950_v0  ;;  %v1897_v27 = vsub.f32 %v5040_v57, %v1896_v23 }
 0x22f   : > { %4138 = vmatpush3.bf16.msra.mxu1 %v4968_v7  ;;  %3718 = vmatprep.mubr.f32.mxu1 %v4952_v1 }
 0x230   : > { %4140 = vmatprep.subr.bf16.mxu1 %v4099_v44 }
 0x232   : > { %3719 = vmatmul.mubr.f32.gmra.mrb[6].mxu1 %v4958_v13 }
 0x233   : > { %4142 = vmatpush3.bf16.msra.mxu1 %v4099_v44  ;;  %3729 = vmatprep.mubr.f32.mxu1 %v4929_v9  ;;  %v1877_v9 = vsub.f32 %v5012_v39, %v1876_v15 }
 0x235   : > { %v1878_v32 = vand.u32 4294901760, %v1877_v9 }
 0x236   : > { %3730 = vmatmul.mubr.f32.vlgmr.msra.gmra.mrb[4].mxu1 %v4950_v0  ;;  %v3140_v0 = vld [vmem:[%s5215_s3 + $0x28] sm:$0xff] }
 0x237   : > { %3732 = vmatprep.mubr.f32.mxu1 %v4952_v1  ;;  %v1797_v19 = vsel %vm1132_vm1, %v3140_v0, 0 }
 0x238   : > { %v5029_v11 = vand.u32 4294901760, %v1797_v19 }
 0x23a   : > { %3733 = vmatmul.mubr.f32.gmra.mrb[6].mxu1 %v4958_v13  ;;  %v5035_v48 = vsub.f32 %v1797_v19, %v5029_v11  ;;  %v1776_v19 = vpop.permute.xlu0 %1775 }
 0x23b   : > { %3743 = vmatprep.mubr.f32.mxu1 %v1878_v32 }
 0x23c   : > { %v1886_v38 = vand.u32 4294901760, %v5035_v48 }
 0x23e   : > { %v1887_v36 = vsub.f32 %v5035_v48, %v1886_v38  ;;  %v1786_v43 = vpop.permute.xlu0 %1785 }
 0x240   : > { %v1888_v17 = vand.u32 4294901760, %v1887_v36 }
 0x2e1   : > { %v3661_v33 = vpop.f32.mrb[4].mxu0 }
 0x2e2   : > { %v1220_v55 = vpop.f32.mrb[5].mxu0  ;;  %v1231_v47 = vadd.f32 %v3661_v33, %v1120_v62  ;;  %v1907_v33 = vsub.f32 %v5044_v22, %v1906_v49 }
 0x2e3   : > { %v1221_v3 = vadd.f32 %v1220_v55, %v1115_v46 }
 0x2e4   : > { %v1908_v0 = vand.u32 4294901760, %v1907_v33 }
 0x2e5   : > { %v3664_v56 = vpop.f32.mrb[6].mxu0 }
 0x2e6   : > { %v1240_v59 = vpop.f32.mrb[7].mxu0  ;;  %v1251_v18 = vadd.f32 %v3664_v56, %v1130_v5 }
 0x2e7   : > { %v1241_v34 = vadd.f32 %v1240_v59, %v1125_v16  ;;  %v1898_v59 = vand.u32 4294901760, %v1897_v27 }
 0x309   : > { %v3731_v37 = vpop.f32.mrb[4].mxu1 }
 0x30a   : > { %v4248_v1 = vadd.f32 %v3731_v37, %v1231_v47  ;;  %v1737_v4 = vpop.f32.mrb[5].mxu1 }
 0x30b   : > { %v4250_v13 = vadd.f32 %v1737_v4, %v1221_v3 }
 0x30c   : > { %4372 = vtanh.f32 %v4248_v1 }
 0x30d   : > { %4374 = vtanh.f32 %v4250_v13  ;;  %v3734_v35 = vpop.f32.mrb[6].mxu1 }
 0x30e   : > { %v4252_v29 = vadd.f32 %v3734_v35, %v1251_v18  ;;  %v1749_v41 = vpop.f32.mrb[7].mxu1  ;;  %v1781_v18 = vpop.permute.xlu1 %1780  ;;  %v3148_v35 = vld [vmem:[%s5215_s3 + $0x48] sm:$0xff] }
 0x30f   : > { %v4254_v7 = vadd.f32 %v1749_v41, %v1241_v34 }
 0x310   : > { %4376 = vtanh.f32 %v4252_v29 }
 0x311   : > { %4378 = vtanh.f32 %v4254_v7  ;;  %v2454_v7 = vsel %vm1132_vm1, %v3148_v35, 0 }
 0x316   : > { %v4373_v45 = vpop.eup %4372 }
 0x317   : > { %v4375_v8 = vpop.eup %4374  ;;  %v1809_v30 = vand.u32 4294901760, %v4373_v45 }
 0x318   : > { %v1806_v60 = vand.u32 4294901760, %v4375_v8 }
 0x319   : > { %v1923_v44 = vsub.f32 %v4373_v45, %v1809_v30  ;;  %v3150_v45 = vld [vmem:[%s5215_s3 + $0x58] sm:$0xff] }
 0x31a   : > { %v4377_v61 = vpop.eup %4376  ;;  %v5047_v25 = vpack.c.bf16 %v1809_v30, %v1806_v60  ;;  %v1916_v2 = vsub.f32 %v4375_v8, %v1806_v60  ;;  %v5109_v30 = vand.u32 4294901760, %v2454_v7  ;;  %v2460_v60 = vsel %vm1132_vm1, %v3150_v45, 0 }
 0x31b   : > { %v4379_v20 = vpop.eup %4378  ;;  %v1815_v24 = vand.u32 4294901760, %v4377_v61  ;;  %v1924_v52 = vand.u32 4294901760, %v1923_v44 }
 0x31c   : > { %v1812_v6 = vand.u32 4294901760, %v4379_v20  ;;  %4144 = vmatprep.subr.bf16.mxu1 %v5047_v25  ;;  %v1917_v40 = vand.u32 4294901760, %v1916_v2  ;;  %v4159_v10 = vpack.c.bf16 %v1923_v44, %v1916_v2 }
 0x31d   : > { %4146 = vmatpush3.bf16.msra.mxu1 %v5047_v25  ;;  %v1925_v26 = vsub.f32 %v1923_v44, %v1924_v52  ;;  %v1937_v31 = vsub.f32 %v4377_v61, %v1815_v24  ;;  %v5117_v44 = vand.u32 4294901760, %v2460_v60 }
 0x31e   : > { %v4147_v21 = vpack.c.bf16 %v1815_v24, %v1812_v6  ;;  %v1918_v58 = vsub.f32 %v1916_v2, %v1917_v40  ;;  %v1930_v53 = vsub.f32 %v4379_v20, %v1812_v6  ;;  %v4175_v54 = vpack.c.bf16 %v1924_v52, %v1917_v40 }
 0x31f   : > { %v1926_v28 = vand.u32 4294901760, %v1925_v26  ;;  %v1938_v9 = vand.u32 4294901760, %v1937_v31  ;;  %v5124_v36 = vsub.f32 %v2460_v60, %v5117_v44 }
 0x320   : > { %4148 = vmatprep.subr.bf16.mxu1 %v4147_v21  ;;  %v1919_v32 = vand.u32 4294901760, %v1918_v58  ;;  %v1931_v55 = vand.u32 4294901760, %v1930_v53  ;;  %v4163_v56 = vpack.c.bf16 %v1937_v31, %v1930_v53 }
 0x321   : > { %4150 = vmatpush3.bf16.msra.mxu1 %v4147_v21  ;;  %v1939_v62 = vsub.f32 %v1937_v31, %v1938_v9 }
 0x322   : > { %v4151_v46 = vpack.c.bf16 %v1926_v28, %v1919_v32  ;;  %v1932_v47 = vsub.f32 %v1930_v53, %v1931_v55  ;;  %v4179_v3 = vpack.c.bf16 %v1938_v9, %v1931_v55 }
 0x323   : > { %v1940_v37 = vand.u32 4294901760, %v1939_v62 }
 0x324   : > { %3744 = vmatmul.mubr.f32.vlgmr.msra.gmra.mrb[8].mxu1 %v1888_v17  ;;  %4152 = vmatprep.subr.bf16.mxu1 %v4151_v46  ;;  %v1933_v1 = vand.u32 4294901760, %v1932_v47 }
 0x325   : > { %4154 = vmatpush3.bf16.msra.mxu1 %v4151_v46  ;;  %3746 = vmatprep.mubr.f32.mxu1 %v1898_v59 }
 0x326   : > { %v4155_v4 = vpack.c.bf16 %v1940_v37, %v1933_v1 }
 0x328   : > { %3747 = vmatmul.mubr.f32.gmra.mrb[10].mxu1 %v1908_v0  ;;  %4156 = vmatprep.subr.bf16.mxu1 %v4155_v4 }
 0x329   : > { %4158 = vmatpush3.bf16.msra.mxu1 %v4155_v4  ;;  %3757 = vmatprep.mubr.f32.mxu1 %v5009_v50 }
 0x32a   : > { %4160 = vmatprep.subr.bf16.mxu1 %v4159_v10 }
 0x32c   : > { %3758 = vmatmul.mubr.f32.vlgmr.msra.gmra.mrb[8].mxu1 %v5029_v11 }
 0x32d   : > { %4162 = vmatpush3.bf16.msra.mxu1 %v4159_v10  ;;  %3760 = vmatprep.mubr.f32.mxu1 %v5031_v12 }
 0x32e   : > { %4164 = vmatprep.subr.bf16.mxu1 %v4163_v56 }
 0x330   : > { %3761 = vmatmul.mubr.f32.gmra.mrb[10].mxu1 %v5037_v51 }
 0x331   : > { %4166 = vmatpush3.bf16.msra.mxu1 %v4163_v56  ;;  %3771 = vmatprep.mubr.f32.mxu1 %v5012_v39  ;;  %v3147_v39 = vld [vmem:[%s5215_s3 + $0x40] sm:$0xff] }
 0x332   : > { %4168 = vmatprep.subr.bf16.mxu1 %v5047_v25 }
 0x334   : > { %3772 = vmatmul.mubr.f32.vlgmr.msra.gmra.mrb[8].mxu1 %v5035_v48 }
 0x335   : > { %4170 = vmatpush3.bf16.msra.mxu1 %v5047_v25  ;;  %3774 = vmatprep.mubr.f32.mxu1 %v5040_v57  ;;  %v2457_v57 = vsel %vm1132_vm1, %v3149_v63, 0 }
 0x336   : > { %4172 = vmatprep.subr.bf16.mxu1 %v4147_v21 }
 0x338   : > { %3775 = vmatmul.mubr.f32.gmra.mrb[10].mxu1 %v5044_v22  ;;  %v5115_v22 = vsub.f32 %v2454_v7, %v5109_v30 }
 0x339   : > { %4174 = vmatpush3.bf16.msra.mxu1 %v4147_v21  ;;  %3785 = vmatprep.mubr.f32.mxu1 %v1876_v15  ;;  %v2451_v15 = vsel %vm1132_vm1, %v3147_v39, 0 }
 0x33a   : > { %4176 = vmatprep.subr.bf16.mxu1 %v4175_v54  ;;  %v5089_v5 = vand.u32 4294901760, %v2451_v15  ;;  %v2543_v20 = vand.u32 4294901760, %v5115_v22 }
 0x33c   : > { %3786 = vmatmul.mubr.f32.vlgmr.msra.gmra.mrb[8].mxu1 %v1886_v38  ;;  %v5092_v13 = vsub.f32 %v2451_v15, %v5089_v5  ;;  %v5111_v38 = vand.u32 4294901760, %v2457_v57  ;;  %v2544_v31 = vsub.f32 %v5115_v22, %v2543_v20 }
 0x33d   : > { %4178 = vmatpush3.bf16.msra.mxu1 %v4175_v54  ;;  %3788 = vmatprep.mubr.f32.mxu1 %v1896_v23  ;;  %v2561_v54 = vand.u32 4294901760, %v5124_v36 }
 0x33e   : > { %4180 = vmatprep.subr.bf16.mxu1 %v4179_v3  ;;  %v2533_v14 = vand.u32 4294901760, %v5092_v13  ;;  %v5120_v23 = vsub.f32 %v2457_v57, %v5111_v38  ;;  %v2545_v62 = vand.u32 4294901760, %v2544_v31 }
 0x33f   : > { %v2562_v37 = vsub.f32 %v5124_v36, %v2561_v54 }
 0x340   : > { %3789 = vmatmul.mubr.f32.gmra.mrb[10].mxu1 %v1906_v49  ;;  %v2552_v6 = vand.u32 4294901760, %v5120_v23 }
 0x341   : > { %4182 = vmatpush3.bf16.msra.mxu1 %v4179_v3  ;;  %3799 = vmatprep.mubr.f32.mxu1 %v5009_v50 }
 0x342   : > { %4184 = vmatprep.subr.bf16.mxu1 %v5047_v25  ;;  %v2553_v9 = vsub.f32 %v5120_v23, %v2552_v6 }
 0x344   : > { %3800 = vmatmul.mubr.f32.vlgmr.msra.gmra.mrb[8].mxu1 %v5029_v11  ;;  %v2554_v4 = vand.u32 4294901760, %v2553_v9 }
 0x345   : > { %4186 = vmatpush3.bf16.msra.mxu1 %v5047_v25  ;;  %3802 = vmatprep.mubr.f32.mxu1 %v5031_v12 }
 0x346   : > { %4188 = vmatprep.subr.bf16.mxu1 %v4147_v21 }
 0x348   : > { %3803 = vmatmul.mubr.f32.gmra.mrb[10].mxu1 %v5037_v51 }
 0x349   : > { %4190 = vmatpush3.bf16.msra.mxu1 %v4147_v21  ;;  %3813 = vmatprep.mubr.f32.mxu1 %v5009_v50  ;;  %v2534_v50 = vsub.f32 %v5092_v13, %v2533_v14 }
 0x34b   : > { %v2535_v16 = vand.u32 4294901760, %v2534_v50 }
 0x34c   : > { %3814 = vmatmul.mubr.f32.vlgmr.msra.gmra.mrb[8].mxu1 %v5029_v11  ;;  %v1791_v11 = vpop.permute.xlu1 %1790 }
 0x34d   : > { %3816 = vmatprep.mubr.f32.mxu1 %v5031_v12 }
 0x350   : > { %3817 = vmatmul.mubr.f32.gmra.mrb[10].mxu1 %v5037_v51 }
 0x351   : > { %3827 = vmatprep.mubr.f32.mxu1 %v2535_v16 }
 0x41f   : > { %v3815_v34 = vpop.f32.mrb[8].mxu1 }
 0x420   : > { %v4255_v29 = vadd.f32 %v3815_v34, %v1781_v18  ;;  %v2397_v41 = vpop.f32.mrb[9].mxu1 }
 0x421   : > { %v4256_v42 = vadd.f32 %v2397_v41, %v1776_v19  ;;  %v2563_v19 = vand.u32 4294901760, %v2562_v37 }
 0x422   : > { %4380 = vtanh.f32 %v4255_v29 }
 0x423   : > { %4382 = vtanh.f32 %v4256_v42  ;;  %v3818_v12 = vpop.f32.mrb[10].mxu1 }
 0x424   : > { %v4257_v48 = vadd.f32 %v3818_v12, %v1791_v11  ;;  %v2409_v51 = vpop.f32.mrb[11].mxu1 }
 0x425   : > { %v4258_v8 = vadd.f32 %v2409_v51, %v1786_v43 }
 0x426   : > { %4384 = vtanh.f32 %v4257_v48  ;;  %v2436_v48 = vpop.permute.xlu0 %2435 }
 0x427   : > { %4386 = vtanh.f32 %v4258_v8 }
 0x42c   : > { %v4381_v61 = vpop.eup %4380 }
 0x42d   : > { %v4383_v25 = vpop.eup %4382  ;;  %v2466_v2 = vand.u32 4294901760, %v4381_v61 }
 0x42e   : > { %v2463_v24 = vand.u32 4294901760, %v4383_v25 }
 0x42f   : > { %v2577_v52 = vsub.f32 %v4381_v61, %v2466_v2 }
 0x430   : > { %v4385_v40 = vpop.eup %4384  ;;  %v5127_v49 = vpack.c.bf16 %v2466_v2, %v2463_v24  ;;  %v2570_v10 = vsub.f32 %v4383_v25, %v2463_v24 }
 0x431   : > { %v4387_v26 = vpop.eup %4386  ;;  %v2472_v27 = vand.u32 4294901760, %v4385_v40  ;;  %v2578_v21 = vand.u32 4294901760, %v2577_v52 }
 0x432   : > { %v2469_v58 = vand.u32 4294901760, %v4387_v26  ;;  %4192 = vmatprep.subr.bf16.mxu1 %v5127_v49  ;;  %v2571_v53 = vand.u32 4294901760, %v2570_v10  ;;  %v4207_v17 = vpack.c.bf16 %v2577_v52, %v2570_v10 }
 0x433   : > { %4194 = vmatpush3.bf16.msra.mxu1 %v5127_v49  ;;  %v2579_v28 = vsub.f32 %v2577_v52, %v2578_v21  ;;  %v2591_v32 = vsub.f32 %v4385_v40, %v2472_v27 }
 0x434   : > { %v4195_v33 = vpack.c.bf16 %v2472_v27, %v2469_v58  ;;  %v2572_v55 = vsub.f32 %v2570_v10, %v2571_v53  ;;  %v2584_v56 = vsub.f32 %v4387_v26, %v2469_v58  ;;  %v4223_v59 = vpack.c.bf16 %v2578_v21, %v2571_v53 }
 0x435   : > { %v2580_v46 = vand.u32 4294901760, %v2579_v28  ;;  %v2592_v47 = vand.u32 4294901760, %v2591_v32 }
 0x436   : > { %4196 = vmatprep.subr.bf16.mxu1 %v4195_v33  ;;  %v2573_v3 = vand.u32 4294901760, %v2572_v55  ;;  %v2585_v0 = vand.u32 4294901760, %v2584_v56  ;;  %v4211_v1 = vpack.c.bf16 %v2591_v32, %v2584_v56 }
 0x437   : > { %4198 = vmatpush3.bf16.msra.mxu1 %v4195_v33  ;;  %v2593_v39 = vsub.f32 %v2591_v32, %v2592_v47 }
 0x438   : > { %v4199_v15 = vpack.c.bf16 %v2580_v46, %v2573_v3  ;;  %v2586_v50 = vsub.f32 %v2584_v56, %v2585_v0  ;;  %v4227_v16 = vpack.c.bf16 %v2592_v47, %v2585_v0 }
 0x439   : > { %v2594_v18 = vand.u32 4294901760, %v2593_v39 }
 0x43a   : > { %3828 = vmatmul.mubr.f32.vlgmr.msra.gmra.mrb[12].mxu1 %v2545_v62  ;;  %4200 = vmatprep.subr.bf16.mxu1 %v4199_v15  ;;  %v2587_v34 = vand.u32 4294901760, %v2586_v50 }
 0x43b   : > { %4202 = vmatpush3.bf16.msra.mxu1 %v4199_v15  ;;  %3830 = vmatprep.mubr.f32.mxu1 %v2554_v4 }
 0x43c   : > { %v4203_v35 = vpack.c.bf16 %v2594_v18, %v2587_v34 }
 0x43e   : > { %3831 = vmatmul.mubr.f32.gmra.mrb[14].mxu1 %v2563_v19  ;;  %4204 = vmatprep.subr.bf16.mxu1 %v4203_v35 }
 0x43f   : > { %4206 = vmatpush3.bf16.msra.mxu1 %v4203_v35  ;;  %3841 = vmatprep.mubr.f32.mxu1 %v5089_v5 }
 0x440   : > { %4208 = vmatprep.subr.bf16.mxu1 %v4207_v17 }
 0x442   : > { %3842 = vmatmul.mubr.f32.vlgmr.msra.gmra.mrb[12].mxu1 %v5109_v30 }
 0x443   : > { %4210 = vmatpush3.bf16.msra.mxu1 %v4207_v17  ;;  %3844 = vmatprep.mubr.f32.mxu1 %v5111_v38 }
 0x444   : > { %4212 = vmatprep.subr.bf16.mxu1 %v4211_v1 }
 0x446   : > { %3845 = vmatmul.mubr.f32.gmra.mrb[16].mxu1 %v5117_v44 }
 0x447   : > { %4214 = vmatpush3.bf16.msra.mxu1 %v4211_v1  ;;  %3855 = vmatprep.mubr.f32.mxu1 %v5092_v13 }
 0x448   : > { %4216 = vmatprep.subr.bf16.mxu1 %v5127_v49 }
 0x44a   : > { %3856 = vmatmul.mubr.f32.vlgmr.msra.gmra.mrb[12].mxu1 %v5115_v22 }
 0x44b   : > { %4218 = vmatpush3.bf16.msra.mxu1 %v5127_v49  ;;  %3858 = vmatprep.mubr.f32.mxu1 %v5120_v23 }
 0x44c   : > { %4220 = vmatprep.subr.bf16.mxu1 %v4195_v33 }
 0x44e   : > { %3859 = vmatmul.mubr.f32.gmra.mrb[18].mxu1 %v5124_v36 }
 0x44f   : > { %4222 = vmatpush3.bf16.msra.mxu1 %v4195_v33  ;;  %3869 = vmatprep.mubr.f32.mxu1 %v2533_v14 }
 0x450   : > { %4224 = vmatprep.subr.bf16.mxu1 %v4223_v59 }
 0x452   : > { %3870 = vmatmul.mubr.f32.vlgmr.msra.gmra.mrb[12].mxu1 %v2543_v20 }
 0x453   : > { %4226 = vmatpush3.bf16.msra.mxu1 %v4223_v59  ;;  %3872 = vmatprep.mubr.f32.mxu1 %v2552_v6 }
 0x454   : > { %4228 = vmatprep.subr.bf16.mxu1 %v4227_v16 }
 0x456   : > { %3873 = vmatmul.mubr.f32.gmra.mrb[20].mxu1 %v2561_v54 }
 0x457   : > { %4230 = vmatpush3.bf16.msra.mxu1 %v4227_v16  ;;  %3883 = vmatprep.mubr.f32.mxu1 %v5089_v5 }
 0x458   : > { %4232 = vmatprep.subr.bf16.mxu1 %v5127_v49 }
 0x45a   : > { %3884 = vmatmul.mubr.f32.vlgmr.msra.gmra.mrb[12].mxu1 %v5109_v30 }
 0x45b   : > { %4234 = vmatpush3.bf16.msra.mxu1 %v5127_v49  ;;  %3886 = vmatprep.mubr.f32.mxu1 %v5111_v38 }
 0x45c   : > { %4236 = vmatprep.subr.bf16.mxu1 %v4195_v33 }
 0x45e   : > { %3887 = vmatmul.mubr.f32.gmra.mrb[22].mxu1 %v5117_v44 }
 0x45f   : > { %4238 = vmatpush3.bf16.msra.mxu1 %v4195_v33  ;;  %3897 = vmatprep.mubr.f32.mxu1 %v5089_v5 }
 0x462   : > { %3898 = vmatmul.mubr.f32.vlgmr.msra.gmra.mrb[12].mxu1 %v5109_v30 }
 0x463   : > { %3900 = vmatprep.mubr.f32.mxu1 %v5111_v38 }
 0x466   : > { %3901 = vmatmul.mubr.f32.gmra.mrb[24].mxu1 %v5117_v44 }
 0x511   : > { %v3832_v13 = vpop.f32.mrb[14].mxu1 }
 0x512   : > { %v2556_v14 = vpop.f32.mrb[15].mxu1 }
 0x519   : > { %v3846_v29 = vpop.f32.mrb[16].mxu1 }
 0x51a   : > { %v2666_v41 = vpop.f32.mrb[17].mxu1 }
 0x521   : > { %v3860_v42 = vpop.f32.mrb[18].mxu1 }
 0x522   : > { %v2763_v63 = vpop.f32.mrb[19].mxu1 }
 0x529   : > { %v3874_v7 = vpop.f32.mrb[20].mxu1 }
 0x52a   : > { %v2860_v11 = vpop.f32.mrb[21].mxu1 }
 0x531   : > { %v3888_v12 = vpop.f32.mrb[22].mxu1 }
 0x532   : > { %v2960_v43 = vpop.f32.mrb[23].mxu1 }
 0x535   : > { %v3899_v5 = vpop.f32.mrb[12].mxu1 }
 0x536   : > { %v3039_v51 = vpop.f32.mrb[13].mxu1 }
 0x537   : > { %v4259_v57 = vadd.f32 %v3039_v51, %v2436_v48 }
 0x539   : > { %3058 = vst [vmem:[%s218_s7] sm:$0x3] %v4259_v57  ;;  %v3902_v45 = vpop.f32.mrb[24].mxu1 }
 0x53a   : > { %v3050_v8 = vpop.f32.mrb[25].mxu1 }
 0x53b   : > { %4401 = shalt.err (!%p4398_p3)
}
 0x53c   : > { %s4402_s16 = scalar_lea.hbm %s5170_s11, 32  ;;  %s4406_s25 = scalar_lea.hbm %s5217_s5, 64 }
 0x53d   : > { %p4403_p4 = scmp.ne.s32.totalorder %s5170_s11, %s4402_s16  ;;  %p4407_p9 = scmp.lt.u32.totalorder %s5170_s11, %s5217_s5 }
 0x53e   : > { %p4408_p10 = scmp.lt.u32.totalorder %s4406_s25, %s4402_s16  ;;  %p4410_p12 = scmp.lt.u32.totalorder %s4402_s16, %s5170_s11 }
 0x53f   : > { %p4404_p7 = pnand %p4403_p4, %p4522_p5 }
 0x540   : > { %p4409_p11 = por %p4408_p10, %p4407_p9 }
 0x541   : > { %p4405_p8 = pneg %p4404_p7 }
 0x542   : > { %p4411_p13 = por %p4410_p12, %p4409_p11 }
 0x544   : > { %p4412_p0 = pnand %p4411_p13, %p4405_p8 }
 0x546   : > { %4415 = shalt.err (!%p4412_p0)
}
 0x547   : > { %4322 = dma.vmem_to_hbm [thread:$0]  (%p4522_p5), %s5172_s8, 32, %s5170_s11, %s3060_s22  }
 0x548 PF: > { %p4328_p1 = scmp.ge.s32.totalorder %s4450_s21, 2  ;;  %s3085_s6 = sand.u32 1, %s4438_s18  }
 0x549   : > { %s3086_s7 = scalar_lea.sflag [#allocation3], %s3085_s6 }
 0x54a   : > { %p4325_p2 = pnand %p4328_p1, %p4526_p6 }
 0x54c   : > { %4433 = dma.done.wait (!%p4325_p2), %s3086_s7, 32  }
 0x54d   : > { %4435 = vsyncadd (!%p4325_p2), %s3086_s7, 4294967264  ;;  %p15_p3 = scmp.ge.s32.totalorder %s4509_s24, 4   ;;  %s5224_s18 = smov %s4442_s19 }
 0x54e   : > { %s5225_s19 = smov %s4446_s20  ;;  %s5226_s20 = smov %s4520_s27 }
 0x54f   : > { %s5227_s21 = smov %s4509_s24  ;;  %17 = sbr.rel (!%p15_p3) target bundleno = 3 (0x3), region = 79 }
 0x556   :  { %3091 = vsyncpa [#allocation3], 1 }
 0x557   :  { %3093 = vsyncpa [#allocation3 + $0x1], 1 }

</bundles_post_ra>
